<compile_context>
chip_gen: v5e
topology: v5e:2x2
jax: 0.10.0
libtpu: 0.0.40
codegen_flags: <defaults>
</compile_context>

<pallas_src>
import jax
import jax.numpy as jnp
from jax.experimental import pallas as pl
from jax.experimental.pallas import tpu as pltpu


def _round_up(x, m):
    return ((x + m - 1) // m) * m


def _pick_divisor_tile(full, max_tile, align):
    """Largest t <= max_tile with full % t == 0 and (t % align == 0 or t == full)."""
    if full <= max_tile:
        return full
    best = None
    t = align
    while t <= max_tile:
        if full % t == 0:
            best = t
        t += align
    return best  # may be None if no aligned divisor fits the budget


def _linear_kernel(x_ref, w_ref, b_ref, o_ref):
    """One (tm, tn) output tile; grid axis 2 (K) accumulates into o_ref.

    o_ref is f32 and its BlockSpec returns the same (i, j) block for every k,
    so the tile stays resident in VMEM across the K reduction — no separate
    accumulator scratch is needed.
    """
    k = pl.program_id(2)

    @pl.when(k == 0)
    def _init():
        # Seed the accumulator with the broadcast bias: costs the same as a
        # zero-init and removes the bias add from the un-hidden epilogue.
        o_ref[...] = jnp.broadcast_to(b_ref[...], o_ref.shape).astype(o_ref.dtype)

    # MXU matmul with f32 accumulation.  (If bf16 streaming of the weight is
    # ever adopted for speed, cast the tiles here and round tm to 16 — kept in
    # f32 for exact parity with nn.Linear numerics.)
    o_ref[...] += jnp.dot(
        x_ref[...], w_ref[...], preferred_element_type=jnp.float32
    )


def fine_tune_dnn_forward(
    x,
    w_padded,
    b_padded,
    num_classes,
    *,
    tm_max=512,
    tn_max=512,
    tk_max=1024,
    allow_xla_fast_path=False,
):
    """Forward pass of FineTuneDNN: y = x @ w + b.

    x:         [B, D]  float32
    w_padded:  [D, Cp] float32  (nn.Linear.weight transposed, N-padded to a
                                 multiple of 128 once at init time; pad cols 0)
    b_padded:  [1, Cp] float32  (zero-padded the same way)
    num_classes: C, logical number of output columns.
    returns:   [B, C] float32
    """
    B, D = x.shape
    Dw, Cp = w_padded.shape
    assert Dw == D and b_padded.shape == (1, Cp) and Cp >= num_classes

    if allow_xla_fast_path and B * D <= 8 * 1024:
        # Tiny-shape escape hatch: one padded (8,128) tile is pure launch
        # overhead in Pallas; XLA's fused dot is at least as fast.  Off by
        # default so callers exercise the kernel path.
        return (x @ w_padded + b_padded)[:, :num_classes]

    # ---- Tile selection ------------------------------------------------------
    # Single M block whenever B <= tm_max -> the weight is streamed from HBM
    # exactly once.
    tm = min(tm_max, _round_up(B, 8))
    Mp = _round_up(B, tm)

    # K tile: pick a multiple-of-128 divisor of D (or D itself) so the weight
    # never needs a per-call K pad.
    tk = _pick_divisor_tile(D, tk_max, 128)
    if tk is None:
        # Slow fallback (not hit by typical shapes): pad K per call.
        tk = tk_max
        Kp = _round_up(D, tk)
    else:
        Kp = D

    # N tile: Cp is a multiple of 128 by construction, so an aligned divisor
    # always exists.
    tn = _pick_divisor_tile(Cp, tn_max, 128)
    assert tn is not None

    # v7x has 2 TensorCores: give a "parallel" axis >= 2 blocks when the shape
    # allows it (no effect on single-TC v5e/v6e).
    if Mp // tm == 1 and Cp // tn == 1 and Cp >= 256 and (Cp // 2) % 128 == 0:
        tn = Cp // 2

    # ---- Pad only what is cheap (x along M; K only on the fallback path).
    # ---- The weight was padded once at init time — no per-call HBM copy. ----
    xp = x
    if Mp != B or Kp != D:
        xp = jnp.pad(x, ((0, Mp - B), (0, Kp - D)))
    wp = w_padded
    if Kp != D:
        wp = jnp.pad(w_padded, ((0, Kp - D), (0, 0)))
    bp = b_padded

    grid = (Mp // tm, Cp // tn, Kp // tk)
    n_m, n_n, _ = grid

    # Double-buffered VMEM footprint with the default tiles is ~10 MiB
    # (x 2 MiB + w 2 MiB + out 1 MiB, x2), under the scoped VMEM default on
    # v5e/v6e/v7x, so no vmem_limit_bytes override is required.
    out = pl.pallas_call(
        _linear_kernel,
        out_shape=jax.ShapeDtypeStruct((Mp, Cp), jnp.float32),
        grid_spec=pltpu.PrefetchScalarGridSpec(
            num_scalar_prefetch=0,
            grid=grid,
            in_specs=[
                pl.BlockSpec((tm, tk), lambda i, j, k: (i, k)),   # x tile
                pl.BlockSpec((tk, tn), lambda i, j, k: (k, j)),   # w tile
                pl.BlockSpec((1, tn), lambda i, j, k: (0, j)),    # bias tile
            ],
            out_specs=pl.BlockSpec((tm, tn), lambda i, j, k: (i, j)),
        ),
        compiler_params=pltpu.CompilerParams(
            dimension_semantics=("parallel", "parallel", "arbitrary"),
        ),
        cost_estimate=pl.CostEstimate(
            flops=2 * Mp * Kp * Cp,
            # Re-reads accounted for: x is streamed once per N block, the
            # weight (and bias) once per M block.
            bytes_accessed=4 * (Mp * Kp * n_n + Kp * Cp * n_m
                                + Cp * n_m + Mp * Cp),
            transcendentals=0,
        ),
    )(xp, wp, bp)

    if Mp != B or Cp != num_classes:
        out = out[:B, :num_classes]
    return out


def init_fine_tune_dnn_params(key, input_dim, num_classes):
    """Deterministic nn.Linear-style init: uniform(-1/sqrt(D), 1/sqrt(D)).

    The weight is returned already transposed to [D, Cp] and padded along N to
    a multiple of 128 (lane-dense output tiles).  The one-time pad here is the
    replacement for the per-forward-call jnp.pad of the whole weight.
    """
    kw, kb = jax.random.split(key)
    bound = 1.0 / jnp.sqrt(jnp.float32(input_dim))
    w = jax.random.uniform(kw, (input_dim, num_classes),
                           minval=-bound, maxval=bound, dtype=jnp.float32)
    b = jax.random.uniform(kb, (1, num_classes),
                           minval=-bound, maxval=bound, dtype=jnp.float32)
    cp = _round_up(num_classes, 128)
    if cp != num_classes:
        w = jnp.pad(w, ((0, 0), (0, cp - num_classes)))
        b = jnp.pad(b, ((0, 0), (0, cp - num_classes)))
    return w, b


if __name__ == "__main__":
    key = jax.random.PRNGKey(0)

    # --- Shipped FineTuneDNN shapes: batch=8, input_dim=32, num_classes=16. --
    # One padded (8,128) tile; kept on the Pallas path here to exercise the
    # kernel (allow_xla_fast_path=True would bypass it in production).
    B, D, C = 8, 32, 16
    k1, k2, k3 = jax.random.split(key, 3)
    x = jax.random.normal(k1, (B, D), dtype=jnp.float32)
    w_p, b_p = init_fine_tune_dnn_params(k2, D, C)

    out = jax.block_until_ready(fine_tune_dnn_forward(x, w_p, b_p, C))
    ref = x @ w_p[:, :C] + b_p[:, :C]
    assert out.shape == (B, C)
    assert jnp.allclose(out, ref, atol=1e-5, rtol=1e-5)

    # --- Larger shapes: multi-step K accumulation into the resident output
    # --- tile (tk=256 -> 4 K steps) and 2 N blocks (both TCs busy on v7x). ---
    B2, D2, C2 = 128, 1024, 200
    k4, k5 = jax.random.split(k3)
    x2 = jax.random.normal(k4, (B2, D2), dtype=jnp.float32)
    w_p2, b_p2 = init_fine_tune_dnn_params(k5, D2, C2)

    out2 = jax.block_until_ready(
        fine_tune_dnn_forward(x2, w_p2, b_p2, C2, tk_max=256))
    ref2 = x2 @ w_p2[:, :C2] + b_p2[:, :C2]
    assert out2.shape == (B2, C2)
    assert jnp.allclose(out2, ref2, atol=1e-4, rtol=1e-4)

    print("KERNEL_OK")
</pallas_src>

<mosaic_0001>
module attributes {stable_mosaic.version = 11 : i64} {
  func.func @_linear_kernel(%arg0: i32, %arg1: i32, %arg2: i32, %arg3: memref<8x32xf32, #tpu.memory_space<vmem>>, %arg4: memref<32x128xf32, #tpu.memory_space<vmem>>, %arg5: memref<1x128xf32, #tpu.memory_space<vmem>>, %arg6: memref<8x128xf32, #tpu.memory_space<vmem>>) attributes {dimension_semantics = [#tpu.dimension_semantics<parallel>, #tpu.dimension_semantics<parallel>, #tpu.dimension_semantics<arbitrary>], iteration_bounds = array<i64: 1, 1, 1>, scalar_prefetch = 0 : i64, scratch_operands = 0 : i64, tpu.core_type = #tpu.core_type<tc>, window_params = [{transform_indices = @transform_0, window_bounds = array<i64: 8, 32>}, {transform_indices = @transform_1, window_bounds = array<i64: 32, 128>}, {transform_indices = @transform_2, window_bounds = array<i64: 1, 128>}, {transform_indices = @transform_3, window_bounds = array<i64: 8, 128>}]} {
    %c0_i32 = arith.constant 0 : i32
    %0 = arith.cmpi eq, %arg2, %c0_i32 : i32
    %1 = arith.extui %0 : i1 to i32
    %c0_i32_0 = arith.constant 0 : i32
    %2 = arith.cmpi ne, %1, %c0_i32_0 : i32
    scf.if %2 {
      %c0_8 = arith.constant 0 : index
      %c0_9 = arith.constant 0 : index
      %9 = vector.load %arg5[%c0_8, %c0_9] : memref<1x128xf32, #tpu.memory_space<vmem>>, vector<1x128xf32>
      %10 = vector.shape_cast %9 : vector<1x128xf32> to vector<1x128xf32>
      %11 = vector.broadcast %10 : vector<1x128xf32> to vector<8x128xf32>
      %c0_10 = arith.constant 0 : index
      %c0_11 = arith.constant 0 : index
      %12 = vector.load %arg6[%c0_10, %c0_11] : memref<8x128xf32, #tpu.memory_space<vmem>>, vector<8x128xf32>
      tpu.vector_store %arg6[%c0_10, %c0_11], %11 {strides = array<i32>} : memref<8x128xf32, #tpu.memory_space<vmem>>, vector<8x128xf32>,
    } else {
    }
    %c0 = arith.constant 0 : index
    %c0_1 = arith.constant 0 : index
    %3 = vector.load %arg6[%c0, %c0_1] : memref<8x128xf32, #tpu.memory_space<vmem>>, vector<8x128xf32>
    %c0_2 = arith.constant 0 : index
    %c0_3 = arith.constant 0 : index
    %4 = vector.load %arg3[%c0_2, %c0_3] : memref<8x32xf32, #tpu.memory_space<vmem>>, vector<8x32xf32>
    %c0_4 = arith.constant 0 : index
    %c0_5 = arith.constant 0 : index
    %5 = vector.load %arg4[%c0_4, %c0_5] : memref<32x128xf32, #tpu.memory_space<vmem>>, vector<32x128xf32>
    %cst = arith.constant dense<0.000000e+00> : vector<8x128xf32>
    %6 = tpu.matmul %4, %5, %cst {dimension_numbers = #tpu.dot_dimension_numbers<[1], [0], [0], [1], [0, 0, 1, 1], [], []>} : vector<8x32xf32>, vector<32x128xf32>, vector<8x128xf32> -> vector<8x128xf32>
    %7 = arith.addf %3, %6 : vector<8x128xf32>
    %c0_6 = arith.constant 0 : index
    %c0_7 = arith.constant 0 : index
    %8 = vector.load %arg6[%c0_6, %c0_7] : memref<8x128xf32, #tpu.memory_space<vmem>>, vector<8x128xf32>
    tpu.vector_store %arg6[%c0_6, %c0_7], %7 {strides = array<i32>} : memref<8x128xf32, #tpu.memory_space<vmem>>, vector<8x128xf32>,
    return
  }
  func.func @transform_0(%arg0: i32, %arg1: i32, %arg2: i32) -> (i32, i32) {
    %c0_i32 = arith.constant 0 : i32
    return %arg0, %arg2 : i32, i32
  }
  func.func @transform_1(%arg0: i32, %arg1: i32, %arg2: i32) -> (i32, i32) {
    %c0_i32 = arith.constant 0 : i32
    return %arg2, %arg1 : i32, i32
  }
  func.func @transform_2(%arg0: i32, %arg1: i32, %arg2: i32) -> (i32, i32) {
    %c0_i32 = arith.constant 0 : i32
    %c0_i32_0 = arith.constant 0 : i32
    return %c0_i32, %arg1 : i32, i32
  }
  func.func @transform_3(%arg0: i32, %arg1: i32, %arg2: i32) -> (i32, i32) {
    %c0_i32 = arith.constant 0 : i32
    return %arg0, %arg1 : i32, i32
  }
}

</mosaic_0001>

<bundles_post_ra>
// kernel: tpu_custom_call.1
= control target key start
LH: loop header
LB: loop body
LE: loop exit
PB: predicated region body
PF: predicated region fallthrough
CT: control target
= control target key end

     0   :  { %8 = vsyncpa [#allocation3], 0  ;;  %s226_s0 = inlined_call_operand.hbm [shape: f32[8,32], index: 0, kind: input, shape index: {}]   ;;  %s227_s1 = inlined_call_operand.hbm [shape: f32[32,128], index: 1, kind: input, shape index: {}]   ;;  %s228_s2 = inlined_call_operand.vmem [shape: f32[1,128], index: 2, kind: input, shape index: {}]   ;;  %s229_s3 = inlined_call_operand.hbm [shape: f32[8,128], index: 3, kind: output, shape index: {}]  }
   0x1   :  { %9 = vsyncpa [#allocation6], 0 }
   0x2   :  { %10 = vsyncpa [#allocation4], 0  ;;  %s16_s14 = sshll.u32 %s226_s0, 4  ;;  %s189_s15 = smov [#allocation2]   ;;  %s17_s14 = int_to_ptr.hbm [resolvable:$true] %s16_s14 }
   0x3   :  { %s18_s16 = sshll.u32 %s189_s15, 4  ;;  %s26_s19 = sshll.u32 %s227_s1, 4  ;;  %s19_s16 = int_to_ptr.vmem [resolvable:$true] %s18_s16  ;;  %s27_s19 = int_to_ptr.hbm [resolvable:$true] %s26_s19 }
   0x4   :  { %21 = dma.hbm_to_vmem [thread:$0]  %s17_s14, 128, %s19_s16, [#allocation3]  }
   0x5   :  { %s190_s20 = smov [#allocation5]   ;;  %s191_s22 = smov 128  }
   0x6   :  { %s28_s21 = sshll.u32 %s190_s20, 4  ;;  %s192_s23 = smov 8   ;;  %s29_s21 = int_to_ptr.vmem [resolvable:$true] %s28_s21 }
   0x7   :  { %34 = dma.hbm_to_vmem [thread:$0]  %s27_s19, 512, %s29_s21, [#allocation6], %s191_s22, %s191_s22, %s192_s23  }
   0x8   :  { %183 = dma.done.wait [#allocation3], 128  }
   0x9   :  { %184 = vsyncadd [#allocation3], 4294967168 }
   0xa   :  { %185 = dma.done.wait [#allocation6], 512  }
   0xb   :  { %186 = vsyncadd [#allocation6], 4294966784  ;;  %v59_v0 = vld [vmem:[#allocation5 + $0x18] sm:$0xff]  ;;  %v58_v1 = vld [vmem:[#allocation5 + $0x10] sm:$0xff]  ;;  %vm60_vm0 = vcmask 261120   ;;  %s193_s24 = smov [#allocation7]  }
   0xc   :  { %76 = vmatpush.msra.mxu0 %v59_v0  ;;  %v57_v2 = vld [vmem:[#allocation5 + $0x8] sm:$0xff]  ;;  %v56_v3 = vld [vmem:[#allocation5] sm:$0xff]  ;;  %v55_v4 = vld [vmem:[#allocation2] sm:$0xff]  ;;  %s91_s25 = sshll.u32 %s193_s24, 4  ;;  %s93_s28 = sshll.u32 %s229_s3, 4  ;;  %s92_s25 = int_to_ptr.vmem [resolvable:$true] %s91_s25  ;;  %s94_s28 = int_to_ptr.hbm [resolvable:$true] %s93_s28 }
   0xd   :  { %v110_v5 = vld [vmem:[%s228_s2] ss:$0 sm:$0xff] }
   0xe   :  { %77 = vmatpush.msra.mxu0 %v58_v1 }
  0x10   :  { %78 = vmatpush.msra.mxu0 %v57_v2 }
  0x12   :  { %79 = vmatpush.msra.mxu0 %v56_v3 }
  0x13   :  { %104 = vmatmul.msk.f32.vlgmr.msra.gmra.mxu0 %vm60_vm0, %v55_v4 }
  0x90   :  { %v81_v6 = vpop.f32.mrf.mxu0 }
  0x91   :  { %v84_v7 = vadd.f32 %v110_v5, %v81_v6 }
  0x93   :  { %85 = vst [vmem:[#allocation7] sm:$0xff] %v84_v7 }
  0x94   :  { %96 = dma.vmem_to_hbm [thread:$0]  %s92_s25, 128, %s94_s28, [#allocation4]  }
  0x95   :  { %187 = dma.done.wait [#allocation4], 128  }
  0x96   :  { %188 = vsyncadd [#allocation4], 4294967168 }
  0x97   :  { %101 = vsyncpa [#allocation3], 1 }
  0x98   :  { %102 = vsyncpa [#allocation6], 1 }
  0x99   :  { %103 = vsyncpa [#allocation4], 1 }

</bundles_post_ra>
